<compile_context>
chip_gen: v7x
topology: tpu7x:2x2x1
jax: 0.10.0
libtpu: 0.0.40
codegen_flags: <defaults>
</compile_context>

<pallas_src>
from functools import partial

import jax
import jax.numpy as jnp
from jax import lax
from jax.experimental import pallas as pl
from jax.experimental.pallas import tpu as pltpu


DEFAULT_BATCH_TILE = 2048   # max rows per grid step


def _round_up(x, m):
    return ((x + m - 1) // m) * m


def _choose_tile(B, batch_tile, align=128):
    """Rows-per-tile + tile count.

    - bt is a multiple of `align` (=128): MXU-friendly M and an unmasked
      lane-dense (1, bt) output store.
    - bt ~ ceil(B / n_tiles): minimises pad waste (B=513 -> 768 padded rows,
      not 1024).
    - prefer >= 2 (even) tiles when there is enough work so both v7x
      TensorCores are fed; neutral on single-TC v5e/v6e.
    """
    n_tiles = max(1, -(-B // max(batch_tile, align)))
    if n_tiles == 1 and B >= 2 * align:
        n_tiles = 2
    if n_tiles > 1 and n_tiles % 2:
        n_tiles += 1
    bt = _round_up(-(-B // n_tiles), align)
    return bt, n_tiles


# ----------------------------------------------------------------------------
# Pallas kernel: fused 3-layer MLP over pre-gathered features
# ----------------------------------------------------------------------------
def _fused_mlp_kernel(rt_ref, emb_ref, w1rt_ref, w1e_ref, b1_ref,
                      w2_ref, b2_ref, w3_ref, b3_ref, o_ref):
    # fc1 as two partial matmuls over the [route|tail] slab and the gathered
    # stop embeddings (== concat([route, emb, tail]) @ W1).  bf16 operands,
    # f32 accumulation; bias add / ReLU in f32.
    h1 = (jnp.dot(rt_ref[...], w1rt_ref[...], preferred_element_type=jnp.float32)
          + jnp.dot(emb_ref[...], w1e_ref[...], preferred_element_type=jnp.float32)
          + b1_ref[...])
    h1 = jnp.maximum(h1, 0.0)

    # fc2 (64 -> 32), bf16 operands, f32 accumulation.
    h2 = jnp.dot(h1.astype(w2_ref.dtype), w2_ref[...],
                 preferred_element_type=jnp.float32) + b2_ref[...]
    h2 = jnp.maximum(h2, 0.0)

    # fc3 (32 -> 1): contract the 32-dim of h2 against the (row-replicated)
    # fc3 weight so the result comes out as a lane-major (*, bt) row =>
    # a single unmasked store per tile instead of bt/8 masked (bt, 1) partial
    # stores.  K=32, N=bt matmul is negligible; MXU is otherwise idle here.
    y = lax.dot_general(w3_ref[...], h2,
                        dimension_numbers=(((1,), (1,)), ((), ())),
                        preferred_element_type=jnp.float32)       # (8, bt)
    o_ref[...] = (y[0:1, :] + b3_ref[...]).astype(o_ref.dtype)    # (1, bt)


def _resident(shape):
    # Constant index map: block stays VMEM-resident across all grid steps.
    return pl.BlockSpec(shape, lambda i: tuple(0 for _ in shape))


def fused_forward(rt, emb, w1_rt, w1_e, b1, w2, b2, w3, b3,
                  *, batch_tile=DEFAULT_BATCH_TILE, compute_dtype=jnp.bfloat16):
    B, d_rt = rt.shape
    d_e = emb.shape[1]
    bt, n_tiles = _choose_tile(B, batch_tile)
    b_pad = bt * n_tiles
    if b_pad != B:
        pad = ((0, b_pad - B), (0, 0))
        rt = jnp.pad(rt, pad)
        emb = jnp.pad(emb, pad)

    # bf16 storage for streams + matmul weights (f32 accumulation in-kernel).
    rt = rt.astype(compute_dtype)
    emb = emb.astype(compute_dtype)
    w1_rt = w1_rt.astype(compute_dtype)
    w1_e = w1_e.astype(compute_dtype)
    w2 = w2.astype(compute_dtype)
    b1 = b1.astype(jnp.float32)
    b2 = b2.astype(jnp.float32)
    # Replicate the fc3 row to 8 sublanes so the in-kernel dot has an aligned
    # M; all 8 result rows are identical, the kernel stores row 0.
    w3_t = jnp.tile(w3.astype(jnp.float32), (8, 1))
    b3 = b3.astype(jnp.float32)

    out = pl.pallas_call(
        _fused_mlp_kernel,
        out_shape=jax.ShapeDtypeStruct((n_tiles, bt), jnp.float32),
        grid=(n_tiles,),
        in_specs=[
            # Streamed, batch-tiled slabs (default double-buffered pipeline).
            pl.BlockSpec((bt, d_rt), lambda i: (i, 0)),
            pl.BlockSpec((bt, d_e), lambda i: (i, 0)),
            # VMEM-resident weights / biases.
            _resident(w1_rt.shape), _resident(w1_e.shape), _resident(b1.shape),
            _resident(w2.shape), _resident(b2.shape),
            _resident(w3_t.shape), _resident(b3.shape),
        ],
        # Lane-dense output: one (1, bt) row per tile.
        out_specs=pl.BlockSpec((1, bt), lambda i: (i, 0)),
        compiler_params=pltpu.CompilerParams(
            # Independent batch tiles -> shard across TCs on v7x megacore.
            dimension_semantics=("parallel",),
            # Footprint ~2*bt*(d_rt+d_e)*2B + a few KB of weights (<2 MiB at
            # bt=2048): explicit 32 MiB keeps us above v5e's 16 MiB scoped
            # default and comfortably under v7x's 64 MiB physical VMEM.
            vmem_limit_bytes=32 * 1024 * 1024,
        ),
    )(rt, emb, w1_rt, w1_e, b1, w2, b2, w3_t, b3)

    # (n_tiles, bt) lane-dense slab -> (B, 1) column (padded rows dropped).
    return out.reshape(b_pad, 1)[:B]


# ----------------------------------------------------------------------------
# Model: parameter init + forward glue
# ----------------------------------------------------------------------------
def init_params(key, num_routes, num_stops, stop_emb_dim=48):
    ks = jax.random.split(key, 7)
    d_in = num_routes + stop_emb_dim + 4

    def lin_w(k, fan_in, rows, cols):
        bound = 1.0 / jnp.sqrt(jnp.float32(fan_in))
        return jax.random.uniform(k, (rows, cols), jnp.float32, -bound, bound)

    def lin_b(k, fan_in, cols):
        bound = 1.0 / jnp.sqrt(jnp.float32(fan_in))
        return jax.random.uniform(k, (1, cols), jnp.float32, -bound, bound)

    return {
        # nn.Embedding default init ~ N(0, 1)
        "stop_emb": jax.random.normal(ks[0], (num_stops, stop_emb_dim), jnp.float32),
        "w1": lin_w(ks[1], d_in, d_in, 64),      # input order: [route|emb|tail]
        "b1": lin_b(ks[2], d_in, 64),
        "w2": lin_w(ks[3], 64, 64, 32),
        "b2": lin_b(ks[4], 64, 32),
        "w3": lin_w(ks[5], 32, 1, 32),           # fc3 weight stored as a (1, 32) row
        "b3": lin_b(ks[6], 32, 1),
    }


@partial(jax.jit, static_argnames=("compute_dtype",))
def arrival_time_forward(params, route_ids, stop_ids, day_features,
                         scheduled_time, prev_arrival_time,
                         compute_dtype=jnp.bfloat16):
    R = route_ids.shape[1]
    E = params["stop_emb"].shape[1]
    # Merge all dense per-row scalars into one slab -> one DMA stream and one
    # fc1 partial matmul (K = R + 4) instead of separate route / tail streams.
    rt = jnp.concatenate(
        [route_ids, day_features, scheduled_time, prev_arrival_time],
        axis=1).astype(jnp.float32)
    # Embedding gather done here as an XLA row gather: kernel cost is then
    # independent of the stop-vocabulary size and no table is VMEM-resident.
    # TODO(synk): fuse as an in-kernel DMA row gather (scalar-prefetched ids +
    # memory_space=pl.ANY table) if the (B, 48) round trip ever matters; at
    # 192 B/row, per-row DMAs would be descriptor/latency bound anyway.
    emb = jnp.take(params["stop_emb"], stop_ids.astype(jnp.int32), axis=0)
    # Split fc1's weight to match the [rt | emb] stream partition.
    w1 = params["w1"]
    w1_rt = jnp.concatenate([w1[:R], w1[R + E:]], axis=0)   # route + tail rows
    w1_e = w1[R:R + E]                                       # embedding rows
    return fused_forward(rt, emb, w1_rt, w1_e, params["b1"],
                         params["w2"], params["b2"], params["w3"], params["b3"],
                         compute_dtype=compute_dtype)


# ----------------------------------------------------------------------------
# Pure-JAX reference (canonical PyTorch semantics) for a sanity check
# ----------------------------------------------------------------------------
def reference_forward(params, route_ids, stop_ids, day_features,
                      scheduled_time, prev_arrival_time):
    stop_embedded = jnp.take(params["stop_emb"], stop_ids, axis=0)
    stop_embedded = stop_embedded.reshape(stop_ids.shape[0], -1)
    x = jnp.concatenate(
        [route_ids, stop_embedded, day_features, scheduled_time, prev_arrival_time],
        axis=1).astype(jnp.float32)
    h1 = jnp.maximum(x @ params["w1"] + params["b1"], 0.0)
    h2 = jnp.maximum(h1 @ params["w2"] + params["b2"], 0.0)
    return h2 @ params["w3"].T + params["b3"]


if __name__ == "__main__":
    # Small deterministic example:
    #   route_ids: (B, num_routes) one-hot, stop_ids: (B,) int32,
    #   day_features: (B, 2), scheduled_time: (B, 1), prev_arrival_time: (B, 1)
    #   => fc1 in_features = num_routes + stop_emb_dim + 4
    B, num_routes, num_stops, stop_emb_dim = 8, 16, 32, 48

    key = jax.random.PRNGKey(0)
    kp, k1, k2, k3, k4, k5 = jax.random.split(key, 6)

    params = init_params(kp, num_routes, num_stops, stop_emb_dim)

    route_idx = jax.random.randint(k1, (B,), 0, num_routes)
    route_ids = jax.nn.one_hot(route_idx, num_routes, dtype=jnp.float32)
    stop_ids = jax.random.randint(k2, (B,), 0, num_stops).astype(jnp.int32)
    day_features = jax.random.normal(k3, (B, 2), jnp.float32)
    scheduled_time = jax.random.normal(k4, (B, 1), jnp.float32)
    prev_arrival_time = jax.random.normal(k5, (B, 1), jnp.float32)

    ref = reference_forward(params, route_ids, stop_ids, day_features,
                            scheduled_time, prev_arrival_time)

    # f32 path: numerically exact (modulo summation order) vs the reference.
    out_f32 = arrival_time_forward(params, route_ids, stop_ids, day_features,
                                   scheduled_time, prev_arrival_time,
                                   compute_dtype=jnp.float32)
    out_f32 = jax.block_until_ready(out_f32)
    assert out_f32.shape == (B, 1), out_f32.shape
    assert jnp.allclose(out_f32, ref, atol=1e-4, rtol=1e-4), "f32 mismatch"

    # Default bf16-storage / f32-accumulation fast path.
    out_bf16 = arrival_time_forward(params, route_ids, stop_ids, day_features,
                                    scheduled_time, prev_arrival_time)
    out_bf16 = jax.block_until_ready(out_bf16)
    assert out_bf16.shape == (B, 1), out_bf16.shape
    assert jnp.allclose(out_bf16, ref, atol=5e-2, rtol=5e-2), "bf16 mismatch"

    print("KERNEL_OK")
</pallas_src>

<mosaic_0001>
module attributes {stable_mosaic.version = 11 : i64} {
  func.func @_fused_mlp_kernel(%arg0: i32, %arg1: memref<128x20xf32, #tpu.memory_space<vmem>>, %arg2: memref<128x48xf32, #tpu.memory_space<vmem>>, %arg3: memref<20x64xf32, #tpu.memory_space<vmem>>, %arg4: memref<48x64xf32, #tpu.memory_space<vmem>>, %arg5: memref<1x64xf32, #tpu.memory_space<vmem>>, %arg6: memref<64x32xf32, #tpu.memory_space<vmem>>, %arg7: memref<1x32xf32, #tpu.memory_space<vmem>>, %arg8: memref<8x32xf32, #tpu.memory_space<vmem>>, %arg9: memref<1x1xf32, #tpu.memory_space<vmem>>, %arg10: memref<1x128xf32, #tpu.memory_space<vmem>>) attributes {dimension_semantics = [#tpu.dimension_semantics<parallel>], iteration_bounds = array<i64: 1>, scalar_prefetch = 0 : i64, scratch_operands = 0 : i64, tpu.core_type = #tpu.core_type<tc>, window_params = [{transform_indices = @transform_0, window_bounds = array<i64: 128, 20>}, {transform_indices = @transform_1, window_bounds = array<i64: 128, 48>}, {pipeline_mode = #tpu.pipeline_mode<synchronous>, transform_indices = @transform_2, window_bounds = array<i64: 20, 64>}, {pipeline_mode = #tpu.pipeline_mode<synchronous>, transform_indices = @transform_3, window_bounds = array<i64: 48, 64>}, {pipeline_mode = #tpu.pipeline_mode<synchronous>, transform_indices = @transform_4, window_bounds = array<i64: 1, 64>}, {pipeline_mode = #tpu.pipeline_mode<synchronous>, transform_indices = @transform_5, window_bounds = array<i64: 64, 32>}, {pipeline_mode = #tpu.pipeline_mode<synchronous>, transform_indices = @transform_6, window_bounds = array<i64: 1, 32>}, {pipeline_mode = #tpu.pipeline_mode<synchronous>, transform_indices = @transform_7, window_bounds = array<i64: 8, 32>}, {pipeline_mode = #tpu.pipeline_mode<synchronous>, transform_indices = @transform_8, window_bounds = array<i64: 1, 1>}, {transform_indices = @transform_9, window_bounds = array<i64: 1, 128>}]} {
    %c0 = arith.constant 0 : index
    %c0_0 = arith.constant 0 : index
    %0 = vector.load %arg1[%c0, %c0_0] : memref<128x20xf32, #tpu.memory_space<vmem>>, vector<128x20xf32>
    %c0_1 = arith.constant 0 : index
    %c0_2 = arith.constant 0 : index
    %1 = vector.load %arg3[%c0_1, %c0_2] : memref<20x64xf32, #tpu.memory_space<vmem>>, vector<20x64xf32>
    %cst = arith.constant dense<0.000000e+00> : vector<128x64xf32>
    %2 = tpu.matmul %0, %1, %cst {dimension_numbers = #tpu.dot_dimension_numbers<[1], [0], [0], [1], [0, 0, 1, 1], [], []>} : vector<128x20xf32>, vector<20x64xf32>, vector<128x64xf32> -> vector<128x64xf32>
    %c0_3 = arith.constant 0 : index
    %c0_4 = arith.constant 0 : index
    %3 = vector.load %arg2[%c0_3, %c0_4] : memref<128x48xf32, #tpu.memory_space<vmem>>, vector<128x48xf32>
    %c0_5 = arith.constant 0 : index
    %c0_6 = arith.constant 0 : index
    %4 = vector.load %arg4[%c0_5, %c0_6] : memref<48x64xf32, #tpu.memory_space<vmem>>, vector<48x64xf32>
    %cst_7 = arith.constant dense<0.000000e+00> : vector<128x64xf32>
    %5 = tpu.matmul %3, %4, %cst_7 {dimension_numbers = #tpu.dot_dimension_numbers<[1], [0], [0], [1], [0, 0, 1, 1], [], []>} : vector<128x48xf32>, vector<48x64xf32>, vector<128x64xf32> -> vector<128x64xf32>
    %6 = arith.addf %2, %5 : vector<128x64xf32>
    %c0_8 = arith.constant 0 : index
    %c0_9 = arith.constant 0 : index
    %7 = vector.load %arg5[%c0_8, %c0_9] : memref<1x64xf32, #tpu.memory_space<vmem>>, vector<1x64xf32>
    %8 = vector.broadcast %7 : vector<1x64xf32> to vector<128x64xf32>
    %9 = arith.addf %6, %8 : vector<128x64xf32>
    %cst_10 = arith.constant 0.000000e+00 : f32
    %10 = vector.broadcast %cst_10 : f32 to vector<128x64xf32>
    %11 = arith.maximumf %9, %10 : vector<128x64xf32>
    %c0_11 = arith.constant 0 : index
    %c0_12 = arith.constant 0 : index
    %12 = vector.load %arg6[%c0_11, %c0_12] : memref<64x32xf32, #tpu.memory_space<vmem>>, vector<64x32xf32>
    %cst_13 = arith.constant dense<0.000000e+00> : vector<128x32xf32>
    %13 = tpu.matmul %11, %12, %cst_13 {dimension_numbers = #tpu.dot_dimension_numbers<[1], [0], [0], [1], [0, 0, 1, 1], [], []>} : vector<128x64xf32>, vector<64x32xf32>, vector<128x32xf32> -> vector<128x32xf32>
    %c0_14 = arith.constant 0 : index
    %c0_15 = arith.constant 0 : index
    %14 = vector.load %arg7[%c0_14, %c0_15] : memref<1x32xf32, #tpu.memory_space<vmem>>, vector<1x32xf32>
    %15 = vector.broadcast %14 : vector<1x32xf32> to vector<128x32xf32>
    %16 = arith.addf %13, %15 : vector<128x32xf32>
    %cst_16 = arith.constant 0.000000e+00 : f32
    %17 = vector.broadcast %cst_16 : f32 to vector<128x32xf32>
    %18 = arith.maximumf %16, %17 : vector<128x32xf32>
    %c0_17 = arith.constant 0 : index
    %c0_18 = arith.constant 0 : index
    %19 = vector.load %arg8[%c0_17, %c0_18] : memref<8x32xf32, #tpu.memory_space<vmem>>, vector<8x32xf32>
    %cst_19 = arith.constant dense<0.000000e+00> : vector<8x128xf32>
    %20 = tpu.matmul %19, %18, %cst_19 {dimension_numbers = #tpu.dot_dimension_numbers<[1], [1], [0], [0], [0, 0, 1, 0], [], []>} : vector<8x32xf32>, vector<128x32xf32>, vector<8x128xf32> -> vector<8x128xf32>
    %21 = vector.extract_strided_slice %20 {offsets = [0, 0], sizes = [1, 128], strides = [1, 1]} : vector<8x128xf32> to vector<1x128xf32>
    %c0_20 = arith.constant 0 : index
    %c0_21 = arith.constant 0 : index
    %22 = vector.load %arg9[%c0_20, %c0_21] : memref<1x1xf32, #tpu.memory_space<vmem>>, vector<1x1xf32>
    %23 = vector.broadcast %22 : vector<1x1xf32> to vector<1x128xf32>
    %24 = arith.addf %21, %23 : vector<1x128xf32>
    %c0_22 = arith.constant 0 : index
    %c0_23 = arith.constant 0 : index
    %25 = vector.load %arg10[%c0_22, %c0_23] : memref<1x128xf32, #tpu.memory_space<vmem>>, vector<1x128xf32>
    tpu.vector_store %arg10[%c0_22, %c0_23], %24 {strides = array<i32>} : memref<1x128xf32, #tpu.memory_space<vmem>>, vector<1x128xf32>,
    return
  }
  func.func @transform_0(%arg0: i32) -> (i32, i32) {
    %c0_i32 = arith.constant 0 : i32
    %c0_i32_0 = arith.constant 0 : i32
    return %arg0, %c0_i32 : i32, i32
  }
  func.func @transform_1(%arg0: i32) -> (i32, i32) {
    %c0_i32 = arith.constant 0 : i32
    %c0_i32_0 = arith.constant 0 : i32
    return %arg0, %c0_i32 : i32, i32
  }
  func.func @transform_2(%arg0: i32) -> (i32, i32) {
    %c0_i32 = arith.constant 0 : i32
    %c0_i32_0 = arith.constant 0 : i32
    %c0_i32_1 = arith.constant 0 : i32
    return %c0_i32, %c0_i32_0 : i32, i32
  }
  func.func @transform_3(%arg0: i32) -> (i32, i32) {
    %c0_i32 = arith.constant 0 : i32
    %c0_i32_0 = arith.constant 0 : i32
    %c0_i32_1 = arith.constant 0 : i32
    return %c0_i32, %c0_i32_0 : i32, i32
  }
  func.func @transform_4(%arg0: i32) -> (i32, i32) {
    %c0_i32 = arith.constant 0 : i32
    %c0_i32_0 = arith.constant 0 : i32
    %c0_i32_1 = arith.constant 0 : i32
    return %c0_i32, %c0_i32_0 : i32, i32
  }
  func.func @transform_5(%arg0: i32) -> (i32, i32) {
    %c0_i32 = arith.constant 0 : i32
    %c0_i32_0 = arith.constant 0 : i32
    %c0_i32_1 = arith.constant 0 : i32
    return %c0_i32, %c0_i32_0 : i32, i32
  }
  func.func @transform_6(%arg0: i32) -> (i32, i32) {
    %c0_i32 = arith.constant 0 : i32
    %c0_i32_0 = arith.constant 0 : i32
    %c0_i32_1 = arith.constant 0 : i32
    return %c0_i32, %c0_i32_0 : i32, i32
  }
  func.func @transform_7(%arg0: i32) -> (i32, i32) {
    %c0_i32 = arith.constant 0 : i32
    %c0_i32_0 = arith.constant 0 : i32
    %c0_i32_1 = arith.constant 0 : i32
    return %c0_i32, %c0_i32_0 : i32, i32
  }
  func.func @transform_8(%arg0: i32) -> (i32, i32) {
    %c0_i32 = arith.constant 0 : i32
    %c0_i32_0 = arith.constant 0 : i32
    %c0_i32_1 = arith.constant 0 : i32
    return %c0_i32, %c0_i32_0 : i32, i32
  }
  func.func @transform_9(%arg0: i32) -> (i32, i32) {
    %c0_i32 = arith.constant 0 : i32
    %c0_i32_0 = arith.constant 0 : i32
    return %arg0, %c0_i32 : i32, i32
  }
}

</mosaic_0001>

<bundles_post_ra>
// kernel: arrival_time_forward.1
= control target key start
LH: loop header
LB: loop body
LE: loop exit
PB: predicated region body
PF: predicated region fallthrough
CT: control target
= control target key end

     0   :  { %vm75_vm0 = vcmask 392192   ;;  %vm318_vm1 = vcmask 1043456   ;;  %vm269_vm2 = vcmask 162816   ;;  %vm521_vm3 = vcmask 523264   ;;  %s1543_s3 = inlined_call_operand.vmem [shape: f32[48,64], index: 3, kind: input, shape index: {}]   ;;  %s1544_s1 = inlined_call_operand.vmem [shape: f32[128,48], index: 1, kind: input, shape index: {}]   ;;  %s1545_s2 = inlined_call_operand.vmem [shape: f32[20,64], index: 2, kind: input, shape index: {}]   ;;  %s1546_s5 = inlined_call_operand.vmem [shape: f32[64,32], index: 5, kind: input, shape index: {}]   ;;  %s1547_s0 = inlined_call_operand.vmem [shape: f32[128,20], index: 0, kind: input, shape index: {}]   ;;  %s1548_s4 = inlined_call_operand.vmem [shape: f32[1,64], index: 4, kind: input, shape index: {}]   ;;  %s1549_s8 = inlined_call_operand.<no memory space> [shape: f32[1,1], index: 8, kind: input, shape index: {}]   ;;  %s1550_s6 = inlined_call_operand.vmem [shape: f32[1,32], index: 6, kind: input, shape index: {}]   ;;  %s1551_s7 = inlined_call_operand.vmem [shape: f32[8,32], index: 7, kind: input, shape index: {}]   ;;  %s1552_s9 = inlined_call_operand.vmem [shape: f32[1,128], index: 9, kind: output, shape index: {}]  }
   0x1   :  { %v69_v0 = vld [vmem:[%s1543_s3] sm:$0xff]  ;;  %v70_v1 = vld [vmem:[%s1543_s3 + $0x8] sm:$0xff]  ;;  %v71_v2 = vld [vmem:[%s1543_s3 + $0x10] sm:$0xff]  ;;  %vm1247_vm4 = vmmov 0   ;;  %vm732_vm5 = vcmask 261120  }
   0x2   :  { %v1161_v3 = vpack.c.bf16 %v70_v1, %v69_v0  ;;  %v72_v4 = vld [vmem:[%s1543_s3 + $0x18] sm:$0xff]  ;;  %v73_v6 = vld [vmem:[%s1543_s3 + $0x20] sm:$0xff]  ;;  %v74_v7 = vld [vmem:[%s1543_s3 + $0x28] sm:$0xff] }
   0x3   :  { %v1165_v5 = vpack.c.bf16 %v72_v4, %v71_v2  ;;  %v53_v8 = vld [vmem:[%s1544_s1] sm:$0xff]  ;;  %v1169_v9 = vpack.c.bf16 %v74_v7, %v73_v6  ;;  %v51_v11 = vld [vmem:[%s1545_s2 + $0x8] sm:$0xff]  ;;  %v55_v14 = vld [vmem:[%s1544_s1 + $0x10] sm:$0xff] }
   0x4   :  { %1162 = vmatprep.subr.bf16.mxu0 %v1161_v3  ;;  %1032 = vmatprep.mubr.msk.f32.mxu0 %vm75_vm0, %v53_v8  ;;  %v50_v10 = vld [vmem:[%s1545_s2] sm:$0xff]  ;;  %v54_v13 = vld [vmem:[%s1544_s1 + $0x8] sm:$0xff]  ;;  %v52_v15 = vld [vmem:[%s1545_s2 + $0x10] sm:$0xf] }
   0x5   :  { %1164 = vmatpush3.bf16.msra.mxu0 %v1161_v3  ;;  %v1173_v12 = vpack.c.bf16 %v51_v11, %v50_v10  ;;  %v506_v16 = vld [vmem:[%s1546_s5] sm:$0xff]  ;;  %v507_v17 = vld [vmem:[%s1546_s5 + $0x8] sm:$0xff]  ;;  %v508_v18 = vld [vmem:[%s1546_s5 + $0x10] sm:$0xff] }
   0x6   :  { %1166 = vmatprep.subr.bf16.mxu0 %v1165_v5  ;;  %v509_v19 = vld [vmem:[%s1546_s5 + $0x18] sm:$0xff]  ;;  %v1177_v20 = vpack.c.bf16 %v507_v17, %v506_v16  ;;  %v510_v23 = vld [vmem:[%s1546_s5 + $0x20] sm:$0xff]  ;;  %v511_v24 = vld [vmem:[%s1546_s5 + $0x28] sm:$0xff] }
   0x7   :  { %v1181_v21 = vpack.c.bf16 %v509_v19, %v508_v18  ;;  %v56_v22 = vld [vmem:[%s1544_s1 + $0x18] sm:$0xff]  ;;  %v57_v25 = vld [vmem:[%s1544_s1 + $0x20] sm:$0xff]  ;;  %v1185_v26 = vpack.c.bf16 %v511_v24, %v510_v23  ;;  %v58_v27 = vld [vmem:[%s1544_s1 + $0x28] sm:$0xff] }
   0x8   :  { %1178 = vmatprep.subr.bf16.mxu1 %v1177_v20  ;;  %v59_v28 = vld [vmem:[%s1544_s1 + $0x30] sm:$0xff]  ;;  %v60_v29 = vld [vmem:[%s1544_s1 + $0x38] sm:$0xff]  ;;  %v61_v30 = vld [vmem:[%s1544_s1 + $0x40] sm:$0xff] }
   0x9   :  { %1168 = vmatpush3.bf16.msra.mxu0 %v1165_v5  ;;  %1180 = vmatpush3.bf16.msra.mxu1 %v1177_v20  ;;  %v62_v31 = vld [vmem:[%s1544_s1 + $0x48] sm:$0xff]  ;;  %v63_v32 = vld [vmem:[%s1544_s1 + $0x50] sm:$0xff]  ;;  %v64_v33 = vld [vmem:[%s1544_s1 + $0x58] sm:$0xff] }
   0xa   :  { %1170 = vmatprep.subr.bf16.mxu0 %v1169_v9  ;;  %1182 = vmatprep.subr.bf16.mxu1 %v1181_v21  ;;  %v65_v34 = vld [vmem:[%s1544_s1 + $0x60] sm:$0xff]  ;;  %v66_v35 = vld [vmem:[%s1544_s1 + $0x68] sm:$0xff]  ;;  %v67_v36 = vld [vmem:[%s1544_s1 + $0x70] sm:$0xff] }
   0xb   :  { %v68_v37 = vld [vmem:[%s1544_s1 + $0x78] sm:$0xff]  ;;  %v34_v38 = vld [vmem:[%s1547_s0] sm:$0xff]  ;;  %v35_v39 = vld [vmem:[%s1547_s0 + $0x8] sm:$0xff] }
   0xc   :  { %v36_v40 = vld [vmem:[%s1547_s0 + $0x10] sm:$0xff]  ;;  %v37_v41 = vld [vmem:[%s1547_s0 + $0x18] sm:$0xff]  ;;  %v38_v42 = vld [vmem:[%s1547_s0 + $0x20] sm:$0xff] }
   0xd   :  { %1172 = vmatpush3.bf16.msra.mxu0 %v1169_v9  ;;  %1184 = vmatpush3.bf16.msra.mxu1 %v1181_v21  ;;  %v39_v43 = vld [vmem:[%s1547_s0 + $0x28] sm:$0xff]  ;;  %v40_v44 = vld [vmem:[%s1547_s0 + $0x30] sm:$0xff]  ;;  %v41_v45 = vld [vmem:[%s1547_s0 + $0x38] sm:$0xff] }
   0xe   :  { %1174 = vmatprep.subr.bf16.mxu0 %v1173_v12  ;;  %1186 = vmatprep.subr.bf16.mxu1 %v1185_v26  ;;  %v42_v46 = vld [vmem:[%s1547_s0 + $0x40] sm:$0xff]  ;;  %v43_v47 = vld [vmem:[%s1547_s0 + $0x48] sm:$0xff]  ;;  %v44_v48 = vld [vmem:[%s1547_s0 + $0x50] sm:$0xff] }
   0xf   :  { %v45_v49 = vld [vmem:[%s1547_s0 + $0x58] sm:$0xff]  ;;  %v46_v50 = vld [vmem:[%s1547_s0 + $0x60] sm:$0xff]  ;;  %v47_v51 = vld [vmem:[%s1547_s0 + $0x68] sm:$0xff] }
  0x10   :  { %1033 = vmatmul.mubr.msk.f32.vlgmr.msra.gmra.mrb[0].mxu0 %vm75_vm0, %v54_v13  ;;  %v48_v52 = vld [vmem:[%s1547_s0 + $0x70] sm:$0xff]  ;;  %v49_v53 = vld [vmem:[%s1547_s0 + $0x78] sm:$0xff]  ;;  %v903_v57 = vld [vmem:[%s1548_s4] ss:$0 sm:$0xff] }
  0x11   :  { %1176 = vmatpush3.bf16.msra.mxu0 %v1173_v12  ;;  %1035 = vmatprep.mubr.msk.f32.mxu0 %vm75_vm0, %v55_v14  ;;  %v512_v54 = vld [vmem:[%s1546_s5 + $0x30] sm:$0xff]  ;;  %v513_v55 = vld [vmem:[%s1546_s5 + $0x38] sm:$0xff]  ;;  %vm1509_vm6 = vmpackc.low %vm732_vm5, %vm732_vm5 }
  0x12   :  { %1060 = vmatprep.subr.msk.mxu0 %vm318_vm1, %v52_v15  ;;  %1188 = vmatpush3.bf16.msra.mxu1 %v1185_v26  ;;  %v1189_v56 = vpack.c.bf16 %v513_v55, %v512_v54 }
  0x14   :  { %1036 = vmatmul.mubr.msk.f32.gmra.mrb[2].mxu0 %vm75_vm0, %v56_v22  ;;  %1190 = vmatprep.subr.bf16.mxu1 %v1189_v56 }
  0x15   :  { %1038 = vmatprep.mubr.msk.f32.mxu0 %vm75_vm0, %v57_v25  ;;  %1061 = vmatpush3.msk.msra.mxu0 %vm318_vm1, %v52_v15 }
  0x16   :  { %1192 = vmatpush3.bf16.msra.mxu1 %v1189_v56 }
  0x18   :  { %1039 = vmatmul.mubr.msk.f32.gmra.mrb[4].mxu0 %vm75_vm0, %v58_v27 }
  0x19   :  { %1041 = vmatprep.mubr.msk.f32.mxu0 %vm75_vm0, %v59_v28 }
  0x1c   :  { %1042 = vmatmul.mubr.msk.f32.gmra.mrb[6].mxu0 %vm75_vm0, %v60_v29 }
  0x1d   :  { %1044 = vmatprep.mubr.msk.f32.mxu0 %vm75_vm0, %v61_v30 }
  0x20   :  { %1045 = vmatmul.mubr.msk.f32.gmra.mrb[8].mxu0 %vm75_vm0, %v62_v31 }
  0x21   :  { %1047 = vmatprep.mubr.msk.f32.mxu0 %vm75_vm0, %v63_v32 }
  0x24   :  { %1048 = vmatmul.mubr.msk.f32.gmra.mrb[10].mxu0 %vm75_vm0, %v64_v33 }
  0x25   :  { %1050 = vmatprep.mubr.msk.f32.mxu0 %vm75_vm0, %v65_v34 }
  0x28   :  { %1051 = vmatmul.mubr.msk.f32.gmra.mrb[12].mxu0 %vm75_vm0, %v66_v35 }
  0x29   :  { %1053 = vmatprep.mubr.msk.f32.mxu0 %vm75_vm0, %v67_v36 }
  0x2c   :  { %1054 = vmatmul.mubr.msk.f32.gmra.mrb[14].mxu0 %vm75_vm0, %v68_v37 }
  0x2d   :  { %1062 = vmatprep.mubr.msk.f32.mxu0 %vm269_vm2, %v34_v38 }
  0x30   :  { %1063 = vmatmul.mubr.msk.f32.vlgmr.msra.gmra.mrb[0].mxu0 %vm269_vm2, %v35_v39 }
  0x31   :  { %1065 = vmatprep.mubr.msk.f32.mxu0 %vm269_vm2, %v36_v40 }
  0x34   :  { %1066 = vmatmul.mubr.msk.f32.gmra.mrb[2].mxu0 %vm269_vm2, %v37_v41 }
  0x35   :  { %1068 = vmatprep.mubr.msk.f32.mxu0 %vm269_vm2, %v38_v42  ;;  %v1246_v42 = vmov 0.0|0.0  }
  0x36   :  { %1193 = vmatprep.subr.bf16.mxu1 %v1246_v42 }
  0x38   :  { %1069 = vmatmul.mubr.msk.f32.gmra.mrb[4].mxu0 %vm269_vm2, %v39_v43  ;;  %v1248_v43 = vmov 0.0  }
  0x39   :  { %1071 = vmatprep.mubr.msk.f32.mxu0 %vm269_vm2, %v40_v44  ;;  %v1249_v44 = vmov 0  }
  0x3a   :  { %1245 = vset.pattern.permute.xlu0 %v1249_v44 }
  0x3c   :  { %1072 = vmatmul.mubr.msk.f32.gmra.mrb[6].mxu0 %vm269_vm2, %v41_v45  ;;  %v14_v45 = vstv %s1549_s8 }
  0x3d   :  { %1074 = vmatprep.mubr.msk.f32.mxu0 %vm269_vm2, %v42_v46  ;;  %15 = vst [vmem:[#allocation2] sm:$0x1] %v14_v45 }
  0x40   :  { %1075 = vmatmul.mubr.msk.f32.gmra.mrb[8].mxu0 %vm269_vm2, %v43_v47  ;;  %v904_v47 = vld [vmem:[%s1550_s6] ss:$0 sm:$0xff] }
  0x41   :  { %1077 = vmatprep.mubr.msk.f32.mxu0 %vm269_vm2, %v44_v48 }
  0x44   :  { %1078 = vmatmul.mubr.msk.f32.gmra.mrb[10].mxu0 %vm269_vm2, %v45_v49  ;;  %v854_v46 = vld [vmem:[#allocation2] sm:$0x1] }
  0x45   :  { %1080 = vmatprep.mubr.msk.f32.mxu0 %vm269_vm2, %v46_v50  ;;  %857 = vperm.xlu0 %1245, %v854_v46  }
  0x48   :  { %1081 = vmatmul.mubr.msk.f32.gmra.mrb[12].mxu0 %vm269_vm2, %v47_v51 }
  0x49   :  { %1083 = vmatprep.mubr.msk.f32.mxu0 %vm269_vm2, %v48_v52 }
  0x4c   :  { %1084 = vmatmul.mubr.msk.f32.gmra.mrb[14].mxu0 %vm269_vm2, %v49_v53 }
  0xc4   :  { %v858_v46 = vpop.permute.xlu0 %857 }
 0x103   :  { %v1064_v58 = vpop.f32.mrb[0].mxu0 }
 0x104   :  { %v475_v59 = vadd.f32 %v1064_v58, %v903_v57  ;;  %v388_v60 = vpop.f32.mrb[1].mxu0 }
 0x105   :  { %v474_v61 = vadd.f32 %v903_v57, %v388_v60 }
 0x106   :  { %v491_v0 = vmax.f32 %v475_v59, 0.0 }
 0x107   :  { %v490_v62 = vmax.f32 %v474_v61, 0.0  ;;  %v1067_v63 = vpop.f32.mrb[2].mxu0 }
 0x108   :  { %v477_v1 = vadd.f32 %v1067_v63, %v903_v57  ;;  %v398_v2 = vpop.f32.mrb[3].mxu0 }
 0x109   :  { %v476_v3 = vadd.f32 %v903_v57, %v398_v2  ;;  %1102 = vmatprep.mubr.msk.f32.mxu1 %vm521_vm3, %v490_v62 }
 0x10a   :  { %1103 = vmatmul.mubr.msk.f32.vlgmr.msra.gmra.mrb[0].mxu1 %vm521_vm3, %v491_v0  ;;  %v493_v6 = vmax.f32 %v477_v1, 0.0 }
 0x10b   :  { %v492_v4 = vmax.f32 %v476_v3, 0.0  ;;  %v1070_v5 = vpop.f32.mrb[4].mxu0 }
 0x10c   :  { %v479_v7 = vadd.f32 %v1070_v5, %v903_v57  ;;  %v408_v8 = vpop.f32.mrb[5].mxu0 }
 0x10d   :  { %v478_v9 = vadd.f32 %v903_v57, %v408_v8  ;;  %1105 = vmatprep.mubr.msk.f32.mxu1 %vm521_vm3, %v492_v4 }
 0x10e   :  { %1106 = vmatmul.mubr.msk.f32.gmra.mrb[2].mxu1 %vm521_vm3, %v493_v6  ;;  %v495_v12 = vmax.f32 %v479_v7, 0.0 }
 0x10f   :  { %v494_v10 = vmax.f32 %v478_v9, 0.0  ;;  %v1073_v11 = vpop.f32.mrb[6].mxu0 }
 0x110   :  { %v481_v13 = vadd.f32 %v1073_v11, %v903_v57  ;;  %v418_v14 = vpop.f32.mrb[7].mxu0 }
 0x111   :  { %v480_v15 = vadd.f32 %v903_v57, %v418_v14  ;;  %1108 = vmatprep.mubr.msk.f32.mxu1 %vm521_vm3, %v494_v10 }
 0x112   :  { %1109 = vmatmul.mubr.msk.f32.gmra.mrb[4].mxu1 %vm521_vm3, %v495_v12  ;;  %v497_v18 = vmax.f32 %v481_v13, 0.0 }
 0x113   :  { %v496_v16 = vmax.f32 %v480_v15, 0.0  ;;  %v1076_v17 = vpop.f32.mrb[8].mxu0 }
 0x114   :  { %v483_v19 = vadd.f32 %v1076_v17, %v903_v57  ;;  %v428_v20 = vpop.f32.mrb[9].mxu0 }
 0x115   :  { %v482_v21 = vadd.f32 %v903_v57, %v428_v20  ;;  %1111 = vmatprep.mubr.msk.f32.mxu1 %vm521_vm3, %v496_v16 }
 0x116   :  { %1112 = vmatmul.mubr.msk.f32.gmra.mrb[6].mxu1 %vm521_vm3, %v497_v18  ;;  %v499_v24 = vmax.f32 %v483_v19, 0.0 }
 0x117   :  { %v498_v22 = vmax.f32 %v482_v21, 0.0  ;;  %v1079_v23 = vpop.f32.mrb[10].mxu0 }
 0x118   :  { %v485_v25 = vadd.f32 %v1079_v23, %v903_v57  ;;  %v438_v26 = vpop.f32.mrb[11].mxu0 }
 0x119   :  { %v484_v27 = vadd.f32 %v903_v57, %v438_v26  ;;  %1114 = vmatprep.mubr.msk.f32.mxu1 %vm521_vm3, %v498_v22 }
 0x11a   :  { %1115 = vmatmul.mubr.msk.f32.gmra.mrb[8].mxu1 %vm521_vm3, %v499_v24  ;;  %v501_v30 = vmax.f32 %v485_v25, 0.0 }
 0x11b   :  { %v500_v28 = vmax.f32 %v484_v27, 0.0  ;;  %v1082_v29 = vpop.f32.mrb[12].mxu0 }
 0x11c   :  { %v487_v31 = vadd.f32 %v1082_v29, %v903_v57  ;;  %v448_v32 = vpop.f32.mrb[13].mxu0 }
 0x11d   :  { %v486_v33 = vadd.f32 %v903_v57, %v448_v32  ;;  %1117 = vmatprep.mubr.msk.f32.mxu1 %vm521_vm3, %v500_v28 }
 0x11e   :  { %1118 = vmatmul.mubr.msk.f32.gmra.mrb[10].mxu1 %vm521_vm3, %v501_v30  ;;  %v503_v36 = vmax.f32 %v487_v31, 0.0 }
 0x11f   :  { %v502_v34 = vmax.f32 %v486_v33, 0.0  ;;  %v1085_v35 = vpop.f32.mrb[14].mxu0 }
 0x120   :  { %v489_v37 = vadd.f32 %v1085_v35, %v903_v57  ;;  %v458_v38 = vpop.f32.mrb[15].mxu0 }
 0x121   :  { %v488_v39 = vadd.f32 %v903_v57, %v458_v38  ;;  %1120 = vmatprep.mubr.msk.f32.mxu1 %vm521_vm3, %v502_v34 }
 0x122   :  { %1121 = vmatmul.mubr.msk.f32.gmra.mrb[12].mxu1 %vm521_vm3, %v503_v36  ;;  %v505_v41 = vmax.f32 %v489_v37, 0.0 }
 0x123   :  { %v504_v40 = vmax.f32 %v488_v39, 0.0 }
 0x125   :  { %1123 = vmatprep.mubr.msk.f32.mxu1 %vm521_vm3, %v504_v40 }
 0x126   :  { %1124 = vmatmul.mubr.msk.f32.gmra.mrb[14].mxu1 %vm521_vm3, %v505_v41  ;;  %v731_v41 = vld [vmem:[%s1551_s7] sm:$0xff] }
 0x127   :  { %1158 = vmatprep.mubr.msk.f32.mxu1 %vm1247_vm4, %v1248_v43  ;;  %v860_v43 = vlaneseq }
 0x129   :  { %v861_v44 = vshrl.u32 %v860_v43, 7 }
 0x12b   :  { %v862_v45 = vsub.s32 0, %v861_v44 }
 0x1dd   :  { %v1104_v48 = vpop.f32.mrb[0].mxu1 }
 0x1de   :  { %v642_v49 = vadd.f32 %v1104_v48, %v904_v47  ;;  %v636_v50 = vpop.f32.mrb[1].mxu1 }
 0x1df   :  { %v637_v51 = vadd.f32 %v904_v47, %v636_v50 }
 0x1e0   :  { %v716_v52 = vmax.f32 %v642_v49, 0.0 }
 0x1e1   :  { %v715_v53 = vmax.f32 %v637_v51, 0.0  ;;  %v1107_v54 = vpop.f32.mrb[2].mxu1 }
 0x1e2   :  { %v652_v55 = vadd.f32 %v1107_v54, %v904_v47  ;;  %v646_v56 = vpop.f32.mrb[3].mxu1 }
 0x1e3   :  { %v1194_v58 = vpack.c.bf16 %v716_v52, %v715_v53  ;;  %v647_v59 = vadd.f32 %v904_v47, %v646_v56 }
 0x1e4   :  { %v718_v60 = vmax.f32 %v652_v55, 0.0 }
 0x1e5   :  { %v717_v61 = vmax.f32 %v647_v59, 0.0  ;;  %v1110_v62 = vpop.f32.mrb[4].mxu1  ;;  %1196 = vmatpush3.bf16.xpose.msk.msra.mxu1 %vm1509_vm6, %v1194_v58 }
 0x1e6   :  { %v662_v63 = vadd.f32 %v1110_v62, %v904_v47  ;;  %v656_v0 = vpop.f32.mrb[5].mxu1  ;;  %1197 = vmatprep.subr.bf16.mxu1 %v1246_v42 }
 0x1e7   :  { %v1198_v1 = vpack.c.bf16 %v718_v60, %v717_v61  ;;  %v657_v2 = vadd.f32 %v904_v47, %v656_v0 }
 0x1e8   :  { %v720_v3 = vmax.f32 %v662_v63, 0.0 }
 0x1e9   :  { %v719_v4 = vmax.f32 %v657_v2, 0.0  ;;  %v1113_v5 = vpop.f32.mrb[6].mxu1 }
 0x1ea   :  { %v672_v6 = vadd.f32 %v1113_v5, %v904_v47  ;;  %v666_v7 = vpop.f32.mrb[7].mxu1 }
 0x1eb   :  { %v1202_v8 = vpack.c.bf16 %v720_v3, %v719_v4  ;;  %v667_v9 = vadd.f32 %v904_v47, %v666_v7 }
 0x1ec   :  { %v722_v10 = vmax.f32 %v672_v6, 0.0 }
 0x1ed   :  { %v721_v11 = vmax.f32 %v667_v9, 0.0  ;;  %v1116_v12 = vpop.f32.mrb[8].mxu1  ;;  %1200 = vmatpush3.bf16.xpose.msk.msra.mxu1 %vm1509_vm6, %v1198_v1 }
 0x1ee   :  { %v682_v13 = vadd.f32 %v1116_v12, %v904_v47  ;;  %v676_v14 = vpop.f32.mrb[9].mxu1  ;;  %1201 = vmatprep.subr.bf16.mxu1 %v1246_v42 }
 0x1ef   :  { %v1206_v15 = vpack.c.bf16 %v722_v10, %v721_v11  ;;  %v677_v16 = vadd.f32 %v904_v47, %v676_v14 }
 0x1f0   :  { %v724_v17 = vmax.f32 %v682_v13, 0.0 }
 0x1f1   :  { %v723_v18 = vmax.f32 %v677_v16, 0.0  ;;  %v1119_v19 = vpop.f32.mrb[10].mxu1 }
 0x1f2   :  { %v692_v20 = vadd.f32 %v1119_v19, %v904_v47  ;;  %v686_v21 = vpop.f32.mrb[11].mxu1 }
 0x1f3   :  { %v1210_v22 = vpack.c.bf16 %v724_v17, %v723_v18  ;;  %v687_v23 = vadd.f32 %v904_v47, %v686_v21 }
 0x1f4   :  { %v726_v24 = vmax.f32 %v692_v20, 0.0 }
 0x1f5   :  { %v725_v25 = vmax.f32 %v687_v23, 0.0  ;;  %v1122_v26 = vpop.f32.mrb[12].mxu1  ;;  %1204 = vmatpush3.bf16.xpose.msk.msra.mxu1 %vm1509_vm6, %v1202_v8 }
 0x1f6   :  { %v702_v27 = vadd.f32 %v1122_v26, %v904_v47  ;;  %v696_v28 = vpop.f32.mrb[13].mxu1  ;;  %1205 = vmatprep.subr.bf16.mxu1 %v1246_v42 }
 0x1f7   :  { %v1214_v29 = vpack.c.bf16 %v726_v24, %v725_v25  ;;  %v697_v30 = vadd.f32 %v904_v47, %v696_v28 }
 0x1f8   :  { %v728_v31 = vmax.f32 %v702_v27, 0.0 }
 0x1f9   :  { %v727_v32 = vmax.f32 %v697_v30, 0.0  ;;  %v1125_v33 = vpop.f32.mrb[14].mxu1 }
 0x1fa   :  { %v712_v34 = vadd.f32 %v1125_v33, %v904_v47  ;;  %v706_v35 = vpop.f32.mrb[15].mxu1 }
 0x1fb   :  { %v1218_v36 = vpack.c.bf16 %v728_v31, %v727_v32  ;;  %v707_v37 = vadd.f32 %v904_v47, %v706_v35  ;;  %v863_v47 = vrot.slane %v858_v46, %v862_v45 }
 0x1fc   :  { %v730_v38 = vmax.f32 %v712_v34, 0.0 }
 0x1fd   :  { %v729_v39 = vmax.f32 %v707_v37, 0.0  ;;  %1208 = vmatpush3.bf16.xpose.msk.msra.mxu1 %vm1509_vm6, %v1206_v15 }
 0x1fe   :  { %1209 = vmatprep.subr.bf16.mxu1 %v1246_v42 }
 0x1ff   :  { %v1222_v40 = vpack.c.bf16 %v730_v38, %v729_v39 }
 0x205   :  { %1212 = vmatpush3.bf16.xpose.msk.msra.mxu1 %vm1509_vm6, %v1210_v22 }
 0x206   :  { %1213 = vmatprep.subr.bf16.mxu1 %v1246_v42 }
 0x20d   :  { %1216 = vmatpush3.bf16.xpose.msk.msra.mxu1 %vm1509_vm6, %v1214_v29 }
 0x20e   :  { %1217 = vmatprep.subr.bf16.mxu1 %v1246_v42 }
 0x215   :  { %1220 = vmatpush3.bf16.xpose.msk.msra.mxu1 %vm1509_vm6, %v1218_v36 }
 0x216   :  { %1221 = vmatprep.subr.bf16.mxu1 %v1246_v42 }
 0x21d   :  { %1224 = vmatpush3.bf16.xpose.msk.msra.mxu1 %vm1509_vm6, %v1222_v40 }
 0x224   :  { %1159 = vmatmul.mubr.msk.f32.vlgmr.msra.gmra.mrb[16].mxu1 %vm732_vm5, %v731_v41 }
 0x2f7   :  { %v850_v48 = vpop.f32.mrb[16].mxu1 }
 0x2f8   :  { %v864_v49 = vadd.f32 %v863_v47, %v850_v48  ;;  %v1160_v50 = vpop.f32.mrb[17].mxu1 }
 0x2fa   :  { %865 = vst [vmem:[%s1552_s9] sm:$0x1] %v864_v49 }

</bundles_post_ra>
